<compile_context>
chip_gen: v7x
topology: tpu7x:2x2x1
jax: 0.10.0
libtpu: 0.0.40
codegen_flags: <defaults>
</compile_context>

<pallas_src>
import jax
import jax.numpy as jnp
from jax.experimental import pallas as pl
from jax.experimental.pallas import tpu as pltpu

LEAKY_SLOPE = 0.2
LANES = 128


def _gp_kernel(alpha_ref, s_ref, t_ref, w1t_ref, w1_ref, b1_ref, w2_ref, out_ref):
    """One grid step == one block of NB samples (channels-first layout).

    alpha_ref : (N_pad,)      f32 SMEM   per-sample interpolation weight
    s_ref     : (NB, C, HW)   f32 VMEM   student block  (fake)
    t_ref     : (NB, C, HW)   f32 VMEM   teacher block  (real)
    w1t_ref   : (ndf, C)      f32 VMEM   W1^T (precomputed in wrapper)
    w1_ref    : (C, ndf)      f32 VMEM   W1
    b1_ref    : (ndf, 1)      f32 VMEM   hidden bias (column vector)
    w2_ref    : (ndf, 1)      f32 VMEM   output weights (column vector)
    out_ref   : (NB, LANES)   f32 VMEM   per-sample penalty, broadcast over lanes
    """
    nb, _, hw = s_ref.shape
    ndf = w1t_ref.shape[0]
    base = pl.program_id(0) * nb

    w1t = w1t_ref[...]                                   # (ndf, C)
    w1 = w1_ref[...]                                     # (C, ndf)
    # Hoist broadcasts once per kernel body (JAX does not CSE broadcast_in_dim).
    b1b = jnp.broadcast_to(b1_ref[...], (ndf, hw))       # (ndf, HW)
    w2b = jnp.broadcast_to(w2_ref[...], (ndf, hw))       # (ndf, HW)

    for i in range(nb):                                  # static unroll, NB small
        a = alpha_ref[base + i]                          # scalar alpha_n (SMEM)
        # interpolated = alpha * real (teacher) + (1 - alpha) * fake (student)
        x = a * t_ref[i] + (1.0 - a) * s_ref[i]          # (C, HW), lane-dense

        # D hidden pre-activation; only the LeakyReLU derivative mask is needed.
        h = jnp.dot(w1t, x, preferred_element_type=jnp.float32) + b1b   # (ndf, HW)
        g_h = jnp.where(h > 0, 1.0, LEAKY_SLOPE) * w2b                  # (ndf, HW)

        # analytic grad of sum(D(x)) wrt x:  grad = W1 @ (mask * w2)
        grad = jnp.dot(w1, g_h, preferred_element_type=jnp.float32)     # (C, HW)

        sq = jnp.sum(grad * grad)                        # ||grad_n||^2
        pen = (jnp.sqrt(sq) - 1.0) ** 2
        # lane-dense row store (value replicated across the 128 lanes)
        out_ref[pl.ds(i, 1), :] = jnp.broadcast_to(pen, (1, out_ref.shape[1]))


def criterion_additional_gp(d_in_S, d_in_T, alpha, w1, b1, w2, lambda_gp):
    """d_in_S, d_in_T: (N, C, H, W) float32. Returns scalar loss."""
    assert d_in_S.shape == d_in_T.shape
    N, C, H, W = d_in_S.shape
    HW = H * W
    ndf = w1.shape[1]

    # channels-first layout: NCHW -> (N, C, H*W).  A free reshape (no transpose,
    # no extra HBM pass); H*W lands on the lane axis -> dense vregs/VMEM tiles.
    s = d_in_S.reshape(N, C, HW)
    t = d_in_T.reshape(N, C, HW)

    # Block of samples per grid step; pad batch so blocks divide evenly.
    NB = N if N <= 8 else 8
    num_blocks = pl.cdiv(N, NB)
    N_pad = num_blocks * NB
    if N_pad != N:
        pad = N_pad - N
        s = jnp.pad(s, ((0, pad), (0, 0), (0, 0)))
        t = jnp.pad(t, ((0, pad), (0, 0), (0, 0)))
        alpha_p = jnp.pad(alpha, (0, pad))
    else:
        alpha_p = alpha

    w1t = w1.T                       # (ndf, C) precomputed -> no in-kernel transpose
    b1_col = b1.reshape(ndf, 1)
    w2_col = w2.reshape(ndf, 1)

    flops_per_sample = (3 * C * HW            # interpolation
                        + 2 * ndf * C * HW    # forward contraction
                        + 2 * ndf * HW        # mask * w2
                        + 2 * C * ndf * HW    # backward contraction
                        + 3 * C * HW + 4)     # square, reduce, penalty
    cost = pl.CostEstimate(
        flops=int(N_pad * flops_per_sample),
        transcendentals=int(N_pad),
        bytes_accessed=int(4 * (2 * N_pad * C * HW + N_pad
                                + ndf * (2 * C + 2) + N_pad * LANES)),
    )

    out = pl.pallas_call(
        _gp_kernel,
        out_shape=jax.ShapeDtypeStruct((N_pad, LANES), jnp.float32),
        grid_spec=pltpu.PrefetchScalarGridSpec(
            num_scalar_prefetch=0,
            grid=(num_blocks,),
            in_specs=[
                pl.BlockSpec(memory_space=pltpu.MemorySpace.SMEM),   # alpha (N_pad,)
                pl.BlockSpec((NB, C, HW), lambda b: (b, 0, 0)),      # student block
                pl.BlockSpec((NB, C, HW), lambda b: (b, 0, 0)),      # teacher block
                pl.BlockSpec((ndf, C), lambda b: (0, 0)),            # W1^T
                pl.BlockSpec((C, ndf), lambda b: (0, 0)),            # W1
                pl.BlockSpec((ndf, 1), lambda b: (0, 0)),            # b1
                pl.BlockSpec((ndf, 1), lambda b: (0, 0)),            # w2
            ],
            out_specs=pl.BlockSpec((NB, LANES), lambda b: (b, 0)),
        ),
        compiler_params=pltpu.CompilerParams(dimension_semantics=("parallel",)),
        cost_estimate=cost,
    )(alpha_p, s, t, w1t, w1, b1_col, w2_col)

    # per-sample penalties are replicated across lanes; take lane 0 of the real
    # samples and finish mean + lambda scaling in JAX (trivial N-element reduce).
    pen = out[:N, 0]
    return jnp.float32(lambda_gp) * jnp.mean(pen)


# ---------------- pure-JAX reference (autodiff through D) ------------------
def _d_forward_ref(x_nchw, w1, b1, w2, b2):
    x = jnp.transpose(x_nchw, (0, 2, 3, 1))                  # NHWC
    h = jnp.einsum('nhwc,cd->nhwd', x, w1) + b1
    a = jnp.where(h > 0, h, LEAKY_SLOPE * h)
    o = jnp.einsum('nhwd,d->nhw', a, w2) + b2
    return o[:, None, :, :]                                  # (N,1,H,W)


def _ref_loss(d_in_S, d_in_T, alpha, w1, b1, w2, b2, lambda_gp):
    a = alpha[:, None, None, None]
    interp = a * d_in_T + (1.0 - a) * d_in_S
    grad = jax.grad(lambda x: jnp.sum(_d_forward_ref(x, w1, b1, w2, b2)))(interp)
    g = grad.reshape(grad.shape[0], -1)
    norm = jnp.sqrt(jnp.sum(g * g, axis=1))
    return lambda_gp * jnp.mean((norm - 1.0) ** 2)


if __name__ == "__main__":
    key = jax.random.PRNGKey(0)
    k_s, k_t, k_a, k_w1, k_b1, k_w2 = jax.random.split(key, 6)

    N, C, H, W = 2, 4, 16, 16
    ndf = 32
    lambda_gp = 10.0

    d_in_S = jax.random.normal(k_s, (N, C, H, W), dtype=jnp.float32)
    d_in_T = jax.random.normal(k_t, (N, C, H, W), dtype=jnp.float32)
    alpha = jax.random.uniform(k_a, (N,), dtype=jnp.float32)   # torch.rand(N,1,1,1)

    # deterministic synthetic discriminator parameters (1x1 conv weights)
    w1 = 0.1 * jax.random.normal(k_w1, (C, ndf), dtype=jnp.float32)
    b1 = 0.05 * jax.random.normal(k_b1, (ndf,), dtype=jnp.float32)
    w2 = 0.1 * jax.random.normal(k_w2, (ndf,), dtype=jnp.float32)
    b2 = jnp.float32(0.0)   # does not affect the gradient penalty

    loss = criterion_additional_gp(d_in_S, d_in_T, alpha, w1, b1, w2, lambda_gp)
    loss = jax.block_until_ready(loss)

    ref = _ref_loss(d_in_S, d_in_T, alpha, w1, b1, w2, b2, lambda_gp)
    assert jnp.allclose(loss, ref, rtol=1e-3, atol=1e-5), (loss, ref)

    print("KERNEL_OK")
</pallas_src>

<mosaic_0001>
module attributes {stable_mosaic.version = 11 : i64} {
  func.func @_gp_kernel(%arg0: i32, %arg1: memref<2xf32, #tpu.memory_space<smem>>, %arg2: memref<2x4x256xf32, #tpu.memory_space<vmem>>, %arg3: memref<2x4x256xf32, #tpu.memory_space<vmem>>, %arg4: memref<32x4xf32, #tpu.memory_space<vmem>>, %arg5: memref<4x32xf32, #tpu.memory_space<vmem>>, %arg6: memref<32x1xf32, #tpu.memory_space<vmem>>, %arg7: memref<32x1xf32, #tpu.memory_space<vmem>>, %arg8: memref<2x128xf32, #tpu.memory_space<vmem>>) attributes {dimension_semantics = [#tpu.dimension_semantics<parallel>], iteration_bounds = array<i64: 1>, scalar_prefetch = 0 : i64, scratch_operands = 0 : i64, tpu.core_type = #tpu.core_type<tc>, window_params = [{transform_indices = @transform_0, window_bounds = array<i64: 2>}, {transform_indices = @transform_1, window_bounds = array<i64: 2, 4, 256>}, {transform_indices = @transform_2, window_bounds = array<i64: 2, 4, 256>}, {pipeline_mode = #tpu.pipeline_mode<synchronous>, transform_indices = @transform_3, window_bounds = array<i64: 32, 4>}, {pipeline_mode = #tpu.pipeline_mode<synchronous>, transform_indices = @transform_4, window_bounds = array<i64: 4, 32>}, {pipeline_mode = #tpu.pipeline_mode<synchronous>, transform_indices = @transform_5, window_bounds = array<i64: 32, 1>}, {pipeline_mode = #tpu.pipeline_mode<synchronous>, transform_indices = @transform_6, window_bounds = array<i64: 32, 1>}, {transform_indices = @transform_7, window_bounds = array<i64: 2, 128>}]} {
    %c2_i32 = arith.constant 2 : i32
    %0 = arith.muli %arg0, %c2_i32 : i32
    %c0 = arith.constant 0 : index
    %c0_0 = arith.constant 0 : index
    %1 = vector.load %arg4[%c0, %c0_0] : memref<32x4xf32, #tpu.memory_space<vmem>>, vector<32x4xf32>
    %c0_1 = arith.constant 0 : index
    %c0_2 = arith.constant 0 : index
    %2 = vector.load %arg5[%c0_1, %c0_2] : memref<4x32xf32, #tpu.memory_space<vmem>>, vector<4x32xf32>
    %c0_3 = arith.constant 0 : index
    %c0_4 = arith.constant 0 : index
    %3 = vector.load %arg6[%c0_3, %c0_4] : memref<32x1xf32, #tpu.memory_space<vmem>>, vector<32x1xf32>
    %4 = vector.shape_cast %3 : vector<32x1xf32> to vector<32x1xf32>
    %5 = vector.broadcast %4 : vector<32x1xf32> to vector<32x256xf32>
    %c0_5 = arith.constant 0 : index
    %c0_6 = arith.constant 0 : index
    %6 = vector.load %arg7[%c0_5, %c0_6] : memref<32x1xf32, #tpu.memory_space<vmem>>, vector<32x1xf32>
    %7 = vector.shape_cast %6 : vector<32x1xf32> to vector<32x1xf32>
    %8 = vector.broadcast %7 : vector<32x1xf32> to vector<32x256xf32>
    %c0_i32 = arith.constant 0 : i32
    %9 = arith.addi %0, %c0_i32 : i32
    %10 = arith.index_cast %9 : i32 to index
    %11 = memref.load %arg1[%10] : memref<2xf32, #tpu.memory_space<smem>>
    %c0_7 = arith.constant 0 : index
    %c0_8 = arith.constant 0 : index
    %c0_9 = arith.constant 0 : index
    %12 = vector.load %arg3[%c0_7, %c0_8, %c0_9] : memref<2x4x256xf32, #tpu.memory_space<vmem>>, vector<1x4x256xf32>
    %13 = vector.shape_cast %12 : vector<1x4x256xf32> to vector<4x256xf32>
    %14 = vector.broadcast %11 : f32 to vector<4x256xf32>
    %15 = arith.mulf %14, %13 : vector<4x256xf32>
    %cst = arith.constant 1.000000e+00 : f32
    %16 = arith.subf %cst, %11 : f32
    %c0_10 = arith.constant 0 : index
    %c0_11 = arith.constant 0 : index
    %c0_12 = arith.constant 0 : index
    %17 = vector.load %arg2[%c0_10, %c0_11, %c0_12] : memref<2x4x256xf32, #tpu.memory_space<vmem>>, vector<1x4x256xf32>
    %18 = vector.shape_cast %17 : vector<1x4x256xf32> to vector<4x256xf32>
    %19 = vector.broadcast %16 : f32 to vector<4x256xf32>
    %20 = arith.mulf %19, %18 : vector<4x256xf32>
    %21 = arith.addf %15, %20 : vector<4x256xf32>
    %cst_13 = arith.constant dense<0.000000e+00> : vector<32x256xf32>
    %22 = tpu.matmul %1, %21, %cst_13 {dimension_numbers = #tpu.dot_dimension_numbers<[1], [0], [0], [1], [0, 0, 1, 1], [], []>} : vector<32x4xf32>, vector<4x256xf32>, vector<32x256xf32> -> vector<32x256xf32>
    %23 = arith.addf %22, %5 : vector<32x256xf32>
    %cst_14 = arith.constant 0.000000e+00 : f32
    %24 = vector.broadcast %cst_14 : f32 to vector<32x256xf32>
    %25 = arith.cmpf ogt, %23, %24 : vector<32x256xf32>
    %cst_15 = arith.constant 1.000000e+00 : f32
    %cst_16 = arith.constant 2.000000e-01 : f32
    %26 = vector.broadcast %cst_15 : f32 to vector<32x256xf32>
    %27 = vector.broadcast %cst_16 : f32 to vector<32x256xf32>
    %28 = arith.select %25, %26, %27 : vector<32x256xi1>, vector<32x256xf32>
    %29 = arith.mulf %28, %8 : vector<32x256xf32>
    %cst_17 = arith.constant dense<0.000000e+00> : vector<4x256xf32>
    %30 = tpu.matmul %2, %29, %cst_17 {dimension_numbers = #tpu.dot_dimension_numbers<[1], [0], [0], [1], [0, 0, 1, 1], [], []>} : vector<4x32xf32>, vector<32x256xf32>, vector<4x256xf32> -> vector<4x256xf32>
    %31 = arith.mulf %30, %30 : vector<4x256xf32>
    %32 = vector.shape_cast %31 : vector<4x256xf32> to vector<1x4x256xf32>
    %cst_18 = arith.constant dense<0.000000e+00> : vector<1xf32>
    %33 = vector.multi_reduction <add>, %32, %cst_18 [1, 2] : vector<1x4x256xf32> to vector<1xf32>
    %34 = vector.shape_cast %33 : vector<1xf32> to vector<1x1x1xf32>
    %35 = vector.extract %34[0, 0, 0] : f32 from vector<1x1x1xf32>
    %36 = math.sqrt %35 : f32
    %cst_19 = arith.constant 1.000000e+00 : f32
    %37 = arith.subf %36, %cst_19 : f32
    %38 = arith.mulf %37, %37 : f32
    %39 = vector.broadcast %38 : f32 to vector<1x128xf32>
    %c0_20 = arith.constant 0 : index
    %c0_21 = arith.constant 0 : index
    %40 = vector.load %arg8[%c0_20, %c0_21] : memref<2x128xf32, #tpu.memory_space<vmem>>, vector<1x128xf32>
    tpu.vector_store %arg8[%c0_20, %c0_21], %39 {strides = array<i32>} : memref<2x128xf32, #tpu.memory_space<vmem>>, vector<1x128xf32>,
    %c1_i32 = arith.constant 1 : i32
    %41 = arith.addi %0, %c1_i32 : i32
    %42 = arith.index_cast %41 : i32 to index
    %43 = memref.load %arg1[%42] : memref<2xf32, #tpu.memory_space<smem>>
    %c1 = arith.constant 1 : index
    %c0_22 = arith.constant 0 : index
    %c0_23 = arith.constant 0 : index
    %44 = vector.load %arg3[%c1, %c0_22, %c0_23] : memref<2x4x256xf32, #tpu.memory_space<vmem>>, vector<1x4x256xf32>
    %45 = vector.shape_cast %44 : vector<1x4x256xf32> to vector<4x256xf32>
    %46 = vector.broadcast %43 : f32 to vector<4x256xf32>
    %47 = arith.mulf %46, %45 : vector<4x256xf32>
    %cst_24 = arith.constant 1.000000e+00 : f32
    %48 = arith.subf %cst_24, %43 : f32
    %c1_25 = arith.constant 1 : index
    %c0_26 = arith.constant 0 : index
    %c0_27 = arith.constant 0 : index
    %49 = vector.load %arg2[%c1_25, %c0_26, %c0_27] : memref<2x4x256xf32, #tpu.memory_space<vmem>>, vector<1x4x256xf32>
    %50 = vector.shape_cast %49 : vector<1x4x256xf32> to vector<4x256xf32>
    %51 = vector.broadcast %48 : f32 to vector<4x256xf32>
    %52 = arith.mulf %51, %50 : vector<4x256xf32>
    %53 = arith.addf %47, %52 : vector<4x256xf32>
    %cst_28 = arith.constant dense<0.000000e+00> : vector<32x256xf32>
    %54 = tpu.matmul %1, %53, %cst_28 {dimension_numbers = #tpu.dot_dimension_numbers<[1], [0], [0], [1], [0, 0, 1, 1], [], []>} : vector<32x4xf32>, vector<4x256xf32>, vector<32x256xf32> -> vector<32x256xf32>
    %55 = arith.addf %54, %5 : vector<32x256xf32>
    %cst_29 = arith.constant 0.000000e+00 : f32
    %56 = vector.broadcast %cst_29 : f32 to vector<32x256xf32>
    %57 = arith.cmpf ogt, %55, %56 : vector<32x256xf32>
    %cst_30 = arith.constant 1.000000e+00 : f32
    %cst_31 = arith.constant 2.000000e-01 : f32
    %58 = vector.broadcast %cst_30 : f32 to vector<32x256xf32>
    %59 = vector.broadcast %cst_31 : f32 to vector<32x256xf32>
    %60 = arith.select %57, %58, %59 : vector<32x256xi1>, vector<32x256xf32>
    %61 = arith.mulf %60, %8 : vector<32x256xf32>
    %cst_32 = arith.constant dense<0.000000e+00> : vector<4x256xf32>
    %62 = tpu.matmul %2, %61, %cst_32 {dimension_numbers = #tpu.dot_dimension_numbers<[1], [0], [0], [1], [0, 0, 1, 1], [], []>} : vector<4x32xf32>, vector<32x256xf32>, vector<4x256xf32> -> vector<4x256xf32>
    %63 = arith.mulf %62, %62 : vector<4x256xf32>
    %64 = vector.shape_cast %63 : vector<4x256xf32> to vector<1x4x256xf32>
    %cst_33 = arith.constant dense<0.000000e+00> : vector<1xf32>
    %65 = vector.multi_reduction <add>, %64, %cst_33 [1, 2] : vector<1x4x256xf32> to vector<1xf32>
    %66 = vector.shape_cast %65 : vector<1xf32> to vector<1x1x1xf32>
    %67 = vector.extract %66[0, 0, 0] : f32 from vector<1x1x1xf32>
    %68 = math.sqrt %67 : f32
    %cst_34 = arith.constant 1.000000e+00 : f32
    %69 = arith.subf %68, %cst_34 : f32
    %70 = arith.mulf %69, %69 : f32
    %71 = vector.broadcast %70 : f32 to vector<1x128xf32>
    %c1_35 = arith.constant 1 : index
    %c0_36 = arith.constant 0 : index
    %72 = vector.load %arg8[%c1_35, %c0_36] : memref<2x128xf32, #tpu.memory_space<vmem>>, vector<1x128xf32>
    tpu.vector_store %arg8[%c1_35, %c0_36], %71 {strides = array<i32>} : memref<2x128xf32, #tpu.memory_space<vmem>>, vector<1x128xf32>,
    return
  }
  func.func @transform_0(%arg0: i32) -> i32 {
    %c0_i32 = arith.constant 0 : i32
    %c0_i32_0 = arith.constant 0 : i32
    return %c0_i32 : i32
  }
  func.func @transform_1(%arg0: i32) -> (i32, i32, i32) {
    %c0_i32 = arith.constant 0 : i32
    %c0_i32_0 = arith.constant 0 : i32
    %c0_i32_1 = arith.constant 0 : i32
    return %arg0, %c0_i32, %c0_i32_0 : i32, i32, i32
  }
  func.func @transform_2(%arg0: i32) -> (i32, i32, i32) {
    %c0_i32 = arith.constant 0 : i32
    %c0_i32_0 = arith.constant 0 : i32
    %c0_i32_1 = arith.constant 0 : i32
    return %arg0, %c0_i32, %c0_i32_0 : i32, i32, i32
  }
  func.func @transform_3(%arg0: i32) -> (i32, i32) {
    %c0_i32 = arith.constant 0 : i32
    %c0_i32_0 = arith.constant 0 : i32
    %c0_i32_1 = arith.constant 0 : i32
    return %c0_i32, %c0_i32_0 : i32, i32
  }
  func.func @transform_4(%arg0: i32) -> (i32, i32) {
    %c0_i32 = arith.constant 0 : i32
    %c0_i32_0 = arith.constant 0 : i32
    %c0_i32_1 = arith.constant 0 : i32
    return %c0_i32, %c0_i32_0 : i32, i32
  }
  func.func @transform_5(%arg0: i32) -> (i32, i32) {
    %c0_i32 = arith.constant 0 : i32
    %c0_i32_0 = arith.constant 0 : i32
    %c0_i32_1 = arith.constant 0 : i32
    return %c0_i32, %c0_i32_0 : i32, i32
  }
  func.func @transform_6(%arg0: i32) -> (i32, i32) {
    %c0_i32 = arith.constant 0 : i32
    %c0_i32_0 = arith.constant 0 : i32
    %c0_i32_1 = arith.constant 0 : i32
    return %c0_i32, %c0_i32_0 : i32, i32
  }
  func.func @transform_7(%arg0: i32) -> (i32, i32) {
    %c0_i32 = arith.constant 0 : i32
    %c0_i32_0 = arith.constant 0 : i32
    return %arg0, %c0_i32 : i32, i32
  }
}

</mosaic_0001>

<bundles_post_ra>
// kernel: tpu_custom_call.1
= control target key start
LH: loop header
LB: loop body
LE: loop exit
PB: predicated region body
PF: predicated region fallthrough
CT: control target
= control target key end

     0   :  { %12 = vsyncpa [#allocation4], 0  ;;  %s901_s0 = inlined_call_operand.vmem [shape: f32[2], index: 0, kind: input, shape index: {}]   ;;  %s902_s1 = inlined_call_operand.vmem [shape: f32[2,4,256], index: 1, kind: input, shape index: {}]   ;;  %s903_s2 = inlined_call_operand.vmem [shape: f32[2,4,256], index: 2, kind: input, shape index: {}]   ;;  %s904_s3 = inlined_call_operand.vmem [shape: f32[32,4], index: 3, kind: input, shape index: {}]   ;;  %s905_s4 = inlined_call_operand.vmem [shape: f32[4,32], index: 4, kind: input, shape index: {}]   ;;  %s906_s5 = inlined_call_operand.vmem [shape: f32[32,1], index: 5, kind: input, shape index: {}]   ;;  %s907_s6 = inlined_call_operand.vmem [shape: f32[32,1], index: 6, kind: input, shape index: {}]   ;;  %s908_s7 = inlined_call_operand.hbm [shape: f32[2,128], index: 7, kind: output, shape index: {}]  }
   0x1   :  { %13 = vsyncpa [#allocation3], 0  ;;  %s20_s26 = sshll.u32 %s901_s0, 4  ;;  %s21_s26 = int_to_ptr.vmem [resolvable:$true] %s20_s26 }
   0x2   :  { %s636_s27 = scalar_lea.vmem %s21_s26, 16  ;;  %p641_p1 = scmp.lt.s32.totalorder %s21_s26, %s21_s26 }
   0x3   :  { %p637_p0 = scmp.ne.s32.totalorder %s21_s26, %s636_s27  ;;  %p642_p2 = scmp.lt.s32.totalorder %s636_s27, %s636_s27 }
   0x5   :  { %p643_p3 = por %p642_p2, %p641_p1 }
   0x7   :  { %p644_p4 = pnand %p643_p3, %p637_p0 }
   0x9   :  { %647 = shalt.err (!%p644_p4)
}
   0xa   :  { %s674_s28 = smov [#allocation2]  }
   0xb   :  { %23 = dma.vmem_to_smem %s21_s26, 16, %s674_s28, [#allocation4]  }
   0xc   :  { %670 = dma.done.wait [#allocation4], 16  }
   0xd   :  { %671 = vsyncadd [#allocation4], 4294967280 }
   0xe   :  { %39 = sfence }
   0xf   :  { %s94_s29 = sld [smem:[#allocation2]]  ;;  %v675_v0 = vmov 0.0   ;;  %v676_v1 = vmov 0   ;;  %v48_v2 = vld [vmem:[%s906_s5 + $0x10] sm:$0xff]  ;;  %v46_v3 = vld [vmem:[%s906_s5] sm:$0xff]  ;;  %v49_v5 = vld [vmem:[%s906_s5 + $0x18] sm:$0xff] }
  0x10   :  { %187 = vmatprep.mubr.f32.mxu0 %v675_v0  ;;  %304 = vmatprep.mubr.f32.mxu1 %v675_v0  ;;  %v95_v4 = vld [vmem:[%s903_s2] sm:$0xff]  ;;  %v47_v6 = vld [vmem:[%s906_s5 + $0x8] sm:$0xff]  ;;  %vm118_vm0 = vcmask 1043456   ;;  %v73_v15 = vld [vmem:[%s907_s6 + $0x18] sm:$0xff]  ;;  %vm105_vm1 = vcmask 31744   ;;  %s792_s9 = sld [smem:[#allocation2 + $0x1]] }
  0x11   :  { %631 = vset.pattern.permute.xlu1 %v676_v1  ;;  %630 = vset.pattern.permute.xlu0 %v676_v1  ;;  %v99_v8 = vld [vmem:[%s902_s1] sm:$0xff]  ;;  %v71_v11 = vld [vmem:[%s907_s6 + $0x8] sm:$0xff]  ;;  %v72_v17 = vld [vmem:[%s907_s6 + $0x10] sm:$0xff]  ;;  %v677_v33 = vmov 0.2   ;;  %vm236_vm10 = vcmask 261120  }
  0x12   :  { %62 = vperm.xlu1 %631, %v48_v2   ;;  %52 = vperm.xlu0 %630, %v46_v3   ;;  %v70_v12 = vld [vmem:[%s907_s6] sm:$0xff]  ;;  %v767_v19 = vld [vmem:[%s904_s3 + $0x8] sm:$0xff]  ;;  %v775_v20 = vld [vmem:[%s904_s3 + $0x10] sm:$0xff]  ;;  %s678_s20 = smov [#allocation5]  }
  0x13   :  { %v757_v18 = vld [vmem:[%s904_s3] sm:$0xff]  ;;  %v783_v21 = vld [vmem:[%s904_s3 + $0x18] sm:$0xff]  ;;  %v591_v48 = vld [vmem:[%s903_s2 + $0x8] sm:$0xff]  ;;  %s573_s21 = sshll.u32 %s678_s20, 4  ;;  %s574_s21 = int_to_ptr.vmem [resolvable:$true] %s573_s21 }
  0x14   :  { %v592_v49 = vld [vmem:[%s902_s1 + $0x8] sm:$0xff]  ;;  %s648_s5 = scalar_lea.vmem %s574_s21, 32  ;;  %p653_p6 = scmp.lt.s32.totalorder %s574_s21, %s574_s21 }
  0x15   :  { %v96_v7 = vstv %s94_s29  ;;  %s98_s16 = ssub.f32 1.0, %s94_s29  ;;  %p649_p5 = scmp.ne.s32.totalorder %s574_s21, %s648_s5 }
  0x16   :  { %v97_v9 = vmul.f32 %v96_v7, %v95_v4  ;;  %67 = vperm.xlu1 %631, %v49_v5   ;;  %57 = vperm.xlu0 %630, %v47_v6   ;;  %s344_s3 = ssub.f32 1.0, %s792_s9  ;;  %v342_v41 = vstv %s792_s9  ;;  %p654_p7 = scmp.lt.s32.totalorder %s648_s5, %s648_s5 }
  0x17   :  { %v100_v10 = vstv %s98_s16  ;;  %v343_v56 = vmul.f32 %v591_v48, %v342_v41 }
  0x18   :  { %v101_v13 = vmul.f32 %v100_v10, %v99_v8  ;;  %v347_v42 = vstv %s344_s3  ;;  %p655_p8 = por %p654_p7, %p653_p6 }
  0x19   :  { %v348_v57 = vmul.f32 %v592_v49, %v347_v42 }
  0x1a   :  { %v102_v14 = vadd.f32 %v101_v13, %v97_v9  ;;  %81 = vperm.xlu1 %631, %v71_v11   ;;  %76 = vperm.xlu0 %630, %v70_v12   ;;  %v841_v12 = vld [vmem:[%s905_s4] sm:$0xf]  ;;  %p656_p9 = pnand %p655_p8, %p649_p5 }
  0x1b   :  { %v349_v3 = vadd.f32 %v348_v57, %v343_v56 }
  0x1c   :  { %v104_v16 = vcombine.high %v102_v14, %v102_v14 }
  0x1d   :  { %v351_v11 = vcombine.high %v349_v3, %v349_v3 }
  0x1e   :  { %582 = vmatprep.subr.msk.mxu0 %vm118_vm0, %v104_v16  ;;  %91 = vperm.xlu1 %631, %v73_v15  }
  0x1f   :  { %583 = vmatpush1.msk.msra.mxu0 %vm118_vm0, %v102_v14  ;;  %86 = vperm.xlu0 %630, %v72_v17  }
  0x20   :  { %584 = vmatmul.mubr.msk.f32.vlgmr.msra.gmra.mrb[0].mxu0 %vm105_vm1, %v757_v18 }
  0x21   :  { %193 = vmatprep.mubr.f32.mxu0 %v675_v0 }
  0x24   :  { %585 = vmatmul.mubr.msk.f32.gmra.mrb[2].mxu0 %vm105_vm1, %v767_v19 }
  0x25   :  { %199 = vmatprep.mubr.f32.mxu0 %v675_v0 }
  0x28   :  { %586 = vmatmul.mubr.msk.f32.gmra.mrb[4].mxu0 %vm105_vm1, %v775_v20 }
  0x29   :  { %205 = vmatprep.mubr.f32.mxu0 %v675_v0 }
  0x2c   :  { %587 = vmatmul.mubr.msk.f32.gmra.mrb[6].mxu0 %vm105_vm1, %v783_v21 }
  0x2d   :  { %533 = vmatprep.mubr.f32.mxu0 %v675_v0 }
  0x91   :  { %v788_v22 = vpop.permute.xlu1 %62  ;;  %v790_v23 = vpop.permute.xlu0 %52 }
  0x95   :  { %v794_v25 = vpop.permute.xlu1 %67  ;;  %v797_v28 = vpop.permute.xlu0 %57 }
  0x99   :  { %v804_v36 = vpop.permute.xlu1 %81  ;;  %v807_v38 = vpop.permute.xlu0 %76 }
  0x9d   :  { %v828_v63 = vpop.permute.xlu1 %91 }
  0x9e   :  { %v830_v1 = vpop.permute.xlu0 %86 }
  0xf3   :  { %v189_v24 = vpop.f32.mrb[0].mxu0 }
  0xf4   :  { %v190_v26 = vadd.f32 %v189_v24, %v790_v23  ;;  %v191_v27 = vpop.f32.mrb[1].mxu0 }
  0xf5   :  { %v192_v29 = vadd.f32 %v191_v27, %v790_v23 }
  0xf6   :  { %vm212_vm2 = vcmp.gt.f32.partialorder %v190_v26, 0.0 }
  0xf7   :  { %vm213_vm3 = vcmp.gt.f32.partialorder %v192_v29, 0.0  ;;  %v195_v30 = vpop.f32.mrb[2].mxu0  ;;  %v220_v34 = vsel %vm212_vm2, 1.0, %v677_v33 }
  0xf8   :  { %v196_v31 = vadd.f32 %v195_v30, %v797_v28  ;;  %v197_v32 = vpop.f32.mrb[3].mxu0  ;;  %v221_v37 = vsel %vm213_vm3, 1.0, %v677_v33  ;;  %v228_v47 = vmul.f32 %v220_v34, %v807_v38 }
  0xf9   :  { %v198_v35 = vadd.f32 %v197_v32, %v797_v28  ;;  %v229_v51 = vmul.f32 %v221_v37, %v807_v38 }
  0xfa   :  { %vm214_vm4 = vcmp.gt.f32.partialorder %v196_v31, 0.0 }
  0xfb   :  { %v222_v39 = vsel %vm214_vm4, 1.0, %v677_v33  ;;  %vm215_vm5 = vcmp.gt.f32.partialorder %v198_v35, 0.0  ;;  %v201_v40 = vpop.f32.mrb[4].mxu0 }
  0xfc   :  { %v230_v43 = vmul.f32 %v222_v39, %v804_v36  ;;  %v223_v44 = vsel %vm215_vm5, 1.0, %v677_v33  ;;  %v202_v45 = vadd.f32 %v201_v40, %v788_v22  ;;  %v203_v46 = vpop.f32.mrb[5].mxu0 }
  0xfd   :  { %v204_v50 = vadd.f32 %v203_v46, %v788_v22  ;;  %v231_v52 = vmul.f32 %v223_v44, %v804_v36 }
  0xfe   :  { %vm216_vm6 = vcmp.gt.f32.partialorder %v202_v45, 0.0  ;;  %v603_v53 = vpack.c.bf16 %v230_v43, %v228_v47 }
  0xff   :  { %vm217_vm7 = vcmp.gt.f32.partialorder %v204_v50, 0.0  ;;  %v207_v54 = vpop.f32.mrb[6].mxu0  ;;  %v601_v55 = vpack.c.bf16 %v231_v52, %v229_v51  ;;  %v224_v60 = vsel %vm216_vm6, 1.0, %v677_v33 }
 0x100   :  { %v208_v58 = vadd.f32 %v207_v54, %v794_v25  ;;  %v209_v59 = vpop.f32.mrb[7].mxu0  ;;  %v225_v62 = vsel %vm217_vm7, 1.0, %v677_v33  ;;  %v232_v4 = vmul.f32 %v224_v60, %v830_v1 }
 0x101   :  { %v210_v61 = vadd.f32 %v209_v59, %v794_v25  ;;  %602 = vmatprep.subr.bf16.mxu1 %v601_v55  ;;  %v233_v7 = vmul.f32 %v225_v62, %v830_v1 }
 0x102   :  { %vm218_vm8 = vcmp.gt.f32.partialorder %v208_v58, 0.0  ;;  %604 = vmatpush1.bf16.msra.mxu1 %v603_v53 }
 0x103   :  { %v226_v2 = vsel %vm218_vm8, 1.0, %v677_v33  ;;  %vm219_vm9 = vcmp.gt.f32.partialorder %v210_v61, 0.0 }
 0x104   :  { %v234_v5 = vmul.f32 %v226_v2, %v828_v63  ;;  %v227_v6 = vsel %vm219_vm9, 1.0, %v677_v33 }
 0x105   :  { %v235_v8 = vmul.f32 %v227_v6, %v828_v63 }
 0x106   :  { %v607_v9 = vpack.c.bf16 %v234_v5, %v232_v4 }
 0x107   :  { %v605_v10 = vpack.c.bf16 %v235_v8, %v233_v7 }
 0x109   :  { %606 = vmatprep.subr.bf16.mxu1 %v605_v10 }
 0x10a   :  { %608 = vmatpush1.bf16.msra.mxu1 %v607_v9 }
 0x10b   :  { %593 = vmatprep.subr.msk.mxu1 %vm118_vm0, %v351_v11 }
 0x10d   :  { %588 = vmatmul.mubr.msk.f32.vlgmr.msra.gmra.mrb[0].mxu1 %vm236_vm10, %v841_v12 }
 0x10e   :  { %594 = vmatpush1.msk.msra.mxu1 %vm118_vm0, %v349_v3  ;;  %420 = vmatprep.mubr.f32.mxu1 %v675_v0 }
 0x111   :  { %595 = vmatmul.mubr.msk.f32.vlgmr.msra.gmra.mrb[2].mxu1 %vm105_vm1, %v757_v18 }
 0x112   :  { %426 = vmatprep.mubr.f32.mxu1 %v675_v0 }
 0x115   :  { %596 = vmatmul.mubr.msk.f32.gmra.mrb[4].mxu1 %vm105_vm1, %v767_v19 }
 0x116   :  { %432 = vmatprep.mubr.f32.mxu1 %v675_v0 }
 0x119   :  { %597 = vmatmul.mubr.msk.f32.gmra.mrb[6].mxu1 %vm105_vm1, %v775_v20 }
 0x11a   :  { %438 = vmatprep.mubr.f32.mxu1 %v675_v0 }
 0x11d   :  { %598 = vmatmul.mubr.msk.f32.gmra.mrb[8].mxu1 %vm105_vm1, %v783_v21 }
 0x1e0   :  { %v306_v13 = vpop.f32.mrb[0].mxu1 }
 0x1e1   :  { %v311_v14 = vmul.f32 %v306_v13, %v306_v13  ;;  %v308_v15 = vpop.f32.mrb[1].mxu1 }
 0x1e2   :  { %v312_v16 = vmul.f32 %v308_v15, %v308_v15 }
 0x1e3   :  { %v313_v17 = vsel %vm118_vm0, %v311_v14, 0.0 }
 0x1e4   :  { %v422_v18 = vpop.f32.mrb[2].mxu1  ;;  %v314_v24 = vsel %vm118_vm0, %v312_v16, 0.0 }
 0x1e5   :  { %v423_v19 = vadd.f32 %v422_v18, %v790_v23  ;;  %v424_v26 = vpop.f32.mrb[3].mxu1  ;;  %v315_v27 = vadd.f32 %v314_v24, %v313_v17 }
 0x1e6   :  { %v425_v20 = vadd.f32 %v424_v26, %v790_v23 }
 0x1e7   :  { %vm445_vm11 = vcmp.gt.f32.partialorder %v423_v19, 0.0  ;;  %316 = vadd.xlane.f32.xlu0 %v315_v27 }
 0x1e8   :  { %vm446_vm12 = vcmp.gt.f32.partialorder %v425_v20, 0.0  ;;  %v428_v0 = vpop.f32.mrb[4].mxu1  ;;  %v453_v30 = vsel %vm445_vm11, 1.0, %v677_v33 }
 0x1e9   :  { %v429_v21 = vadd.f32 %v428_v0, %v797_v28  ;;  %v430_v29 = vpop.f32.mrb[5].mxu1  ;;  %v454_v32 = vsel %vm446_vm12, 1.0, %v677_v33  ;;  %v461_v23 = vmul.f32 %v453_v30, %v807_v38 }
 0x1ea   :  { %v431_v31 = vadd.f32 %v430_v29, %v797_v28  ;;  %v462_v42 = vmul.f32 %v454_v32, %v807_v38 }
 0x1eb   :  { %vm447_vm13 = vcmp.gt.f32.partialorder %v429_v21, 0.0 }
 0x1ec   :  { %v455_v34 = vsel %vm447_vm13, 1.0, %v677_v33  ;;  %vm448_vm14 = vcmp.gt.f32.partialorder %v431_v31, 0.0  ;;  %v434_v35 = vpop.f32.mrb[6].mxu1 }
 0x1ed   :  { %v463_v37 = vmul.f32 %v455_v34, %v804_v36  ;;  %v456_v39 = vsel %vm448_vm14, 1.0, %v677_v33  ;;  %v435_v40 = vadd.f32 %v434_v35, %v788_v22  ;;  %v436_v41 = vpop.f32.mrb[7].mxu1 }
 0x1ee   :  { %v464_v28 = vmul.f32 %v456_v39, %v804_v36  ;;  %v437_v43 = vadd.f32 %v436_v41, %v788_v22 }
 0x1ef   :  { %v611_v44 = vpack.c.bf16 %v463_v37, %v461_v23  ;;  %vm449_vm15 = vcmp.gt.f32.partialorder %v435_v40, 0.0 }
 0x1f0   :  { %vm450_vm1 = vcmp.gt.f32.partialorder %v437_v43, 0.0  ;;  %v440_v45 = vpop.f32.mrb[8].mxu1  ;;  %v609_v46 = vpack.c.bf16 %v464_v28, %v462_v42  ;;  %v457_v49 = vsel %vm449_vm15, 1.0, %v677_v33 }
 0x1f1   :  { %v441_v47 = vadd.f32 %v440_v45, %v794_v25  ;;  %v442_v48 = vpop.f32.mrb[9].mxu1  ;;  %v458_v51 = vsel %vm450_vm1, 1.0, %v677_v33  ;;  %v465_v22 = vmul.f32 %v457_v49, %v830_v1 }
 0x1f2   :  { %v443_v50 = vadd.f32 %v442_v48, %v794_v25  ;;  %610 = vmatprep.subr.bf16.mxu0 %v609_v46  ;;  %v466_v53 = vmul.f32 %v458_v51, %v830_v1 }
 0x1f3   :  { %vm451_vm2 = vcmp.gt.f32.partialorder %v441_v47, 0.0  ;;  %612 = vmatpush1.bf16.msra.mxu0 %v611_v44 }
 0x1f4   :  { %v459_v36 = vsel %vm451_vm2, 1.0, %v677_v33  ;;  %vm452_vm3 = vcmp.gt.f32.partialorder %v443_v50, 0.0 }
 0x1f5   :  { %v467_v38 = vmul.f32 %v459_v36, %v828_v63  ;;  %v460_v52 = vsel %vm452_vm3, 1.0, %v677_v33 }
 0x1f6   :  { %v468_v54 = vmul.f32 %v460_v52, %v828_v63 }
 0x1f7   :  { %v615_v55 = vpack.c.bf16 %v467_v38, %v465_v22 }
 0x1f8   :  { %v613_v25 = vpack.c.bf16 %v468_v54, %v466_v53 }
 0x1fa   :  { %614 = vmatprep.subr.bf16.mxu0 %v613_v25 }
 0x1fb   :  { %616 = vmatpush1.bf16.msra.mxu0 %v615_v55 }
 0x1fe   :  { %599 = vmatmul.mubr.msk.f32.vlgmr.msra.gmra.mrb[8].mxu0 %vm236_vm10, %v841_v12 }
 0x274   :  { %v317_v56 = vpop.xlane.xlu0 %316 }
 0x275   :  { %v318_v57 = vrot.slane %v317_v56, 4 }
 0x277   :  { %v319_v58 = vadd.f32 %v318_v57, %v317_v56 }
 0x279   :  { %v320_v59 = vrot.slane %v319_v58, 2 }
 0x27b   :  { %v321_v60 = vadd.f32 %v320_v59, %v319_v58 }
 0x27d   :  { %v322_v61 = vrot.slane %v321_v60, 1 }
 0x27f   :  { %v323_v62 = vadd.f32 %v322_v61, %v321_v60 }
 0x281   :  { %617 = vpush %v323_v62 }
 0x2b2   :  { %s618_s4 = spop %617 }
 0x2b3   :  { %v325_v33 = vstv %s618_s4 }
 0x2b4   :  { %632 = vrsqrt.f32 %v325_v33  ;;  %vm328_vm4 = vcmp.eq.f32.partialorder %v325_v33, inf  ;;  %v331_v2 = vand.u32 2147483648, %v325_v33  ;;  %vm330_vm5 = vcmp.eq.f32.partialorder %v325_v33, 0.0 }
 0x2be   :  { %v633_v1 = vpop.eup %632 }
 0x2bf   :  { %v327_v63 = vmul.f32 %v633_v1, %v325_v33 }
 0x2c1   :  { %v329_v3 = vsel %vm328_vm4, %v325_v33, %v327_v63 }
 0x2c2   :  { %v332_v4 = vsel %vm330_vm5, %v331_v2, %v329_v3 }
 0x2c3   :  { %619 = vpush %v332_v4 }
 0x2d1   :  { %v535_v5 = vpop.f32.mrb[8].mxu0 }
 0x2d2   :  { %v540_v6 = vmul.f32 %v535_v5, %v535_v5  ;;  %v537_v7 = vpop.f32.mrb[9].mxu0 }
 0x2d3   :  { %v541_v8 = vmul.f32 %v537_v7, %v537_v7 }
 0x2d4   :  { %v542_v9 = vsel %vm118_vm0, %v540_v6, 0.0 }
 0x2d5   :  { %v543_v10 = vsel %vm118_vm0, %v541_v8, 0.0 }
 0x2d6   :  { %v544_v11 = vadd.f32 %v543_v10, %v542_v9 }
 0x2d8   :  { %545 = vadd.xlane.f32.xlu1 %v544_v11 }
 0x2f4   :  { %s620_s14 = spop %619 }
 0x2f5   :  { %s589_s15 = sadd.f32 -1.0, %s620_s14 }
 0x2f7   :  { %s335_s16 = smul.f32 %s589_s15, %s589_s15 }
 0x2f9   :  { %v336_v12 = vstv %s335_s16 }
 0x2fa   :  { %337 = vst [vmem:[#allocation5] sm:$0x1] %v336_v12 }
 0x365   :  { %v546_v13 = vpop.xlane.xlu1 %545 }
 0x366   :  { %v547_v14 = vrot.slane %v546_v13, 4 }
 0x368   :  { %v548_v15 = vadd.f32 %v547_v14, %v546_v13 }
 0x36a   :  { %v549_v16 = vrot.slane %v548_v15, 2 }
 0x36c   :  { %v550_v17 = vadd.f32 %v549_v16, %v548_v15 }
 0x36e   :  { %v551_v18 = vrot.slane %v550_v17, 1 }
 0x370   :  { %v552_v24 = vadd.f32 %v551_v18, %v550_v17 }
 0x372   :  { %621 = vpush %v552_v24 }
 0x3a3   :  { %s622_s17 = spop %621 }
 0x3a4   :  { %v554_v19 = vstv %s622_s17 }
 0x3a5   :  { %634 = vrsqrt.f32 %v554_v19  ;;  %vm557_vm0 = vcmp.eq.f32.partialorder %v554_v19, inf  ;;  %v560_v20 = vand.u32 2147483648, %v554_v19  ;;  %vm559_vm6 = vcmp.eq.f32.partialorder %v554_v19, 0.0 }
 0x3af   :  { %v635_v26 = vpop.eup %634 }
 0x3b0   :  { %v556_v27 = vmul.f32 %v635_v26, %v554_v19 }
 0x3b2   :  { %v558_v0 = vsel %vm557_vm0, %v554_v19, %v556_v27 }
 0x3b3   :  { %v561_v21 = vsel %vm559_vm6, %v560_v20, %v558_v0 }
 0x3b4   :  { %623 = vpush %v561_v21 }
 0x3e5   :  { %s624_s18 = spop %623 }
 0x3e6   :  { %s600_s19 = sadd.f32 -1.0, %s624_s18 }
 0x3e8   :  { %s564_s22 = smul.f32 %s600_s19, %s600_s19 }
 0x3ea   :  { %v565_v29 = vstv %s564_s22 }
 0x3eb   :  { %566 = vst [vmem:[#allocation5 + $0x1] sm:$0x1] %v565_v29 }
 0x3ec   :  { %659 = shalt.err (!%p656_p9)
}
 0x3ed   :  { %s660_s25 = scalar_lea.hbm %s908_s7, 32 }
 0x3ee   :  { %p661_p10 = scmp.ne.s32.totalorder %s908_s7, %s660_s25  ;;  %p664_p11 = scmp.lt.u32.totalorder %s660_s25, %s908_s7 }
 0x3f0   :  { %p666_p12 = pnand %p664_p11, %p661_p10 }
 0x3f2   :  { %669 = shalt.err (!%p666_p12)
}
 0x3f3   :  { %576 = dma.vmem_to_hbm [thread:$0]  %s574_s21, 32, %s908_s7, [#allocation3]  }
 0x3f4   :  { %672 = dma.done.wait [#allocation3], 32  }
 0x3f5   :  { %673 = vsyncadd [#allocation3], 4294967264 }
 0x3f6   :  { %580 = vsyncpa [#allocation3], 1 }
 0x3f7   :  { %581 = vsyncpa [#allocation4], 1 }

</bundles_post_ra>
